<compile_context>
chip_gen: v7x
topology: tpu7x:2x2x1
jax: 0.10.0
libtpu: 0.0.40
codegen_flags: <defaults>
</compile_context>

<pallas_src>
import jax
import jax.numpy as jnp
from jax.experimental import pallas as pl
from jax.experimental.pallas import tpu as pltpu


def _elu(v):
    return jnp.where(v > 0, v, jnp.exp(jnp.minimum(v, 0.0)) - 1.0)


def _resblock_kernel(x_ref, ea_ref, row_ref, col_ref, col_t_ref,
                     wdn_n_ref, bdn_n_ref, wdn_e_ref, bdn_e_ref,
                     we_src_ref, we_dst_ref, we_ea_ref, be_ref,
                     wn1_x_ref, wn1_e_ref, bn1_ref,
                     wn2_x_ref, wn2_a_ref, bn2_ref,
                     wup_n_ref, bup_n_ref, wup_e_ref, bup_e_ref,
                     x_out_ref, ea_out_ref):
    f32 = jnp.float32
    x = x_ref[...]                       # [N, C]
    ea = ea_ref[...]                     # [E, C]
    n_nodes = x.shape[0]
    n_edges = ea.shape[0]

    def mm(a, b):
        return jnp.dot(a, b, preferred_element_type=f32)

    # --- projectDown + (folded) BN + ELU ----------------------------------
    h_node = _elu(mm(x, wdn_n_ref[...]) + bdn_n_ref[...])       # [N, C4]
    h_edge = _elu(mm(ea, wdn_e_ref[...]) + bdn_e_ref[...])      # [E, C4]

    # --- one-hot selection matrices: gather/scatter on the MXU ------------
    iota_en = jax.lax.broadcasted_iota(jnp.int32, (n_edges, n_nodes), 1)
    g_row = (row_ref[...] == iota_en).astype(f32)               # [E, N]
    g_col = (col_ref[...] == iota_en).astype(f32)               # [E, N]
    iota_ne = jax.lax.broadcasted_iota(jnp.int32, (n_nodes, n_edges), 0)
    s_col = (col_t_ref[...] == iota_ne).astype(f32)             # [N, E]

    src = mm(g_row, h_node)                                     # h_node[row]
    dst = mm(g_col, h_node)                                     # h_node[col]

    # --- EdgeModel: Linear(cat[src, dst, edge_attr]) + BN + ELU -----------
    h_edge_new = _elu(mm(src, we_src_ref[...]) + mm(dst, we_dst_ref[...])
                      + mm(h_edge, we_ea_ref[...]) + be_ref[...])   # [E, C4]

    # --- NodeModel ---------------------------------------------------------
    msg = _elu(mm(src, wn1_x_ref[...]) + mm(h_edge_new, wn1_e_ref[...])
               + bn1_ref[...])                                   # [E, C4]
    sums = mm(s_col, msg)                                        # [N, C4]
    counts = jnp.sum(s_col, axis=1, keepdims=True)               # [N, 1]
    agg = sums / jnp.maximum(counts, 1.0)                        # scatter_mean
    h_node_new = _elu(mm(h_node, wn2_x_ref[...]) + mm(agg, wn2_a_ref[...])
                      + bn2_ref[...])                            # [N, C4]

    # --- projectUp + (folded) BN + dropout(eval=id) + residual + ELU ------
    x_out_ref[...] = _elu(mm(h_node_new, wup_n_ref[...]) + bup_n_ref[...] + x)
    ea_out_ref[...] = _elu(mm(h_edge_new, wup_e_ref[...]) + bup_e_ref[...] + ea)


def resblock_forward_pallas(params, x, edge_index, edge_attr, batch=None,
                            eps=1e-5):
    """Eval-mode ResBlock.forward; returns (new_x, new_edge_attr)."""
    del batch  # passed through in the original module, unused by eval forward
    n, c = x.shape
    e = edge_attr.shape[0]
    c4 = c // 4

    def fold(lin_p, bn_p):
        scale = bn_p["gamma"] / jnp.sqrt(bn_p["var"] + eps)
        w = (lin_p["w"] * scale[None, :]).astype(jnp.float32)
        b = (lin_p["b"] * scale + bn_p["beta"] - bn_p["mean"] * scale)
        return w, b.reshape(1, -1).astype(jnp.float32)

    wdn_n, bdn_n = fold(params["down_node"], params["bn1_node"])
    wdn_e, bdn_e = fold(params["down_edge"], params["bn1_edge"])
    we, be = fold(params["edge_mlp"], params["bn_edge_mlp"])
    wn1, bn1 = fold(params["node_mlp1"], params["bn_node_mlp1"])
    wn2, bn2 = fold(params["node_mlp2"], params["bn_node_mlp2"])
    wup_n, bup_n = fold(params["up_node"], params["bn2_node"])
    wup_e, bup_e = fold(params["up_edge"], params["bn2_edge"])

    # Split the concat-Linears so the kernel never materializes a concat.
    we_src, we_dst, we_ea = we[:c4], we[c4:2 * c4], we[2 * c4:]
    wn1_x, wn1_e = wn1[:c4], wn1[c4:]
    wn2_x, wn2_a = wn2[:c4], wn2[c4:]

    row = edge_index[0].astype(jnp.int32).reshape(e, 1)
    col = edge_index[1].astype(jnp.int32).reshape(e, 1)
    col_t = edge_index[1].astype(jnp.int32).reshape(1, e)

    vmem = pl.BlockSpec(memory_space=pltpu.MemorySpace.VMEM)
    ins = [x, edge_attr, row, col, col_t,
           wdn_n, bdn_n, wdn_e, bdn_e,
           we_src, we_dst, we_ea, be,
           wn1_x, wn1_e, bn1,
           wn2_x, wn2_a, bn2,
           wup_n, bup_n, wup_e, bup_e]

    x_out, ea_out = pl.pallas_call(
        _resblock_kernel,
        in_specs=[vmem] * len(ins),
        out_specs=[vmem, vmem],
        out_shape=[jax.ShapeDtypeStruct((n, c), x.dtype),
                   jax.ShapeDtypeStruct((e, c), edge_attr.dtype)],
    )(*ins)
    return x_out, ea_out


# ----------------------------- pure-JAX reference ---------------------------
def resblock_reference(params, x, edge_index, edge_attr, eps=1e-5):
    hp = jax.lax.Precision.HIGHEST

    def lin(p, v):
        return jnp.dot(v, p["w"], precision=hp) + p["b"]

    def bn(p, v):
        return (v - p["mean"]) * (p["gamma"] / jnp.sqrt(p["var"] + eps)) + p["beta"]

    row, col = edge_index[0], edge_index[1]
    h_node = _elu(bn(params["bn1_node"], lin(params["down_node"], x)))
    h_edge = _elu(bn(params["bn1_edge"], lin(params["down_edge"], edge_attr)))

    e_in = jnp.concatenate([h_node[row], h_node[col], h_edge], axis=1)
    h_edge2 = _elu(bn(params["bn_edge_mlp"], lin(params["edge_mlp"], e_in)))

    n1_in = jnp.concatenate([h_node[row], h_edge2], axis=1)
    msg = _elu(bn(params["bn_node_mlp1"], lin(params["node_mlp1"], n1_in)))
    n = x.shape[0]
    sums = jnp.zeros((n, msg.shape[1]), msg.dtype).at[col].add(msg)
    counts = jnp.zeros((n,), msg.dtype).at[col].add(1.0)
    agg = sums / jnp.maximum(counts, 1.0)[:, None]
    n2_in = jnp.concatenate([h_node, agg], axis=1)
    h_node2 = _elu(bn(params["bn_node_mlp2"], lin(params["node_mlp2"], n2_in)))

    x_out = _elu(bn(params["bn2_node"], lin(params["up_node"], h_node2)) + x)
    ea_out = _elu(bn(params["bn2_edge"], lin(params["up_edge"], h_edge2))
                  + edge_attr)
    return x_out, ea_out


def init_params(key, in_channels):
    c, c4 = in_channels, in_channels // 4

    def lin(k, fin, fout):
        kw, kb = jax.random.split(k)
        return {"w": jax.random.normal(kw, (fin, fout), jnp.float32) * (fin ** -0.5),
                "b": jax.random.normal(kb, (fout,), jnp.float32) * 0.05}

    def bn(k, f):
        kg, kb, km, kv = jax.random.split(k, 4)
        # NOTE: the PyTorch module zero-inits bn2_{node,edge}.weight; random
        # gammas are used here so the residual branch is actually exercised.
        return {"gamma": jax.random.uniform(kg, (f,), jnp.float32, 0.5, 1.5),
                "beta": jax.random.normal(kb, (f,), jnp.float32) * 0.1,
                "mean": jax.random.normal(km, (f,), jnp.float32) * 0.1,
                "var": jax.random.uniform(kv, (f,), jnp.float32, 0.5, 1.5)}

    ks = jax.random.split(key, 14)
    return {
        "down_node": lin(ks[0], c, c4), "bn1_node": bn(ks[1], c4),
        "down_edge": lin(ks[2], c, c4), "bn1_edge": bn(ks[3], c4),
        "edge_mlp": lin(ks[4], 3 * c4, c4), "bn_edge_mlp": bn(ks[5], c4),
        "node_mlp1": lin(ks[6], 2 * c4, c4), "bn_node_mlp1": bn(ks[7], c4),
        "node_mlp2": lin(ks[8], 2 * c4, c4), "bn_node_mlp2": bn(ks[9], c4),
        "up_node": lin(ks[10], c4, c), "bn2_node": bn(ks[11], c),
        "up_edge": lin(ks[12], c4, c), "bn2_edge": bn(ks[13], c),
    }


if __name__ == "__main__":
    key = jax.random.PRNGKey(0)
    N, E, C = 16, 24, 32   # nodes, edges, in_channels (C4 = 8)

    k_p, k_x, k_ea, k_r, k_c = jax.random.split(key, 5)
    params = init_params(k_p, C)
    x = jax.random.normal(k_x, (N, C), jnp.float32)
    edge_attr = jax.random.normal(k_ea, (E, C), jnp.float32)
    edge_index = jnp.stack([jax.random.randint(k_r, (E,), 0, N),
                            jax.random.randint(k_c, (E,), 0, N)]).astype(jnp.int32)
    batch = jnp.zeros((N,), jnp.int32)   # carried by the module, unused in eval

    x_out, ea_out = resblock_forward_pallas(params, x, edge_index, edge_attr,
                                            batch)
    jax.block_until_ready((x_out, ea_out))

    x_ref, ea_ref = resblock_reference(params, x, edge_index, edge_attr)
    assert x_out.shape == (N, C) and ea_out.shape == (E, C)
    assert jnp.allclose(x_out, x_ref, atol=1e-2, rtol=1e-2), (
        float(jnp.max(jnp.abs(x_out - x_ref))))
    assert jnp.allclose(ea_out, ea_ref, atol=1e-2, rtol=1e-2), (
        float(jnp.max(jnp.abs(ea_out - ea_ref))))

    print("KERNEL_OK")
</pallas_src>

<mosaic_0001>
module attributes {stable_mosaic.version = 11 : i64} {
  func.func @_resblock_kernel(%arg0: memref<16x32xf32, #tpu.memory_space<vmem>>, %arg1: memref<24x32xf32, #tpu.memory_space<vmem>>, %arg2: memref<24x1xi32, #tpu.memory_space<vmem>>, %arg3: memref<24x1xi32, #tpu.memory_space<vmem>>, %arg4: memref<1x24xi32, #tpu.memory_space<vmem>>, %arg5: memref<32x8xf32, #tpu.memory_space<vmem>>, %arg6: memref<1x8xf32, #tpu.memory_space<vmem>>, %arg7: memref<32x8xf32, #tpu.memory_space<vmem>>, %arg8: memref<1x8xf32, #tpu.memory_space<vmem>>, %arg9: memref<8x8xf32, #tpu.memory_space<vmem>>, %arg10: memref<8x8xf32, #tpu.memory_space<vmem>>, %arg11: memref<8x8xf32, #tpu.memory_space<vmem>>, %arg12: memref<1x8xf32, #tpu.memory_space<vmem>>, %arg13: memref<8x8xf32, #tpu.memory_space<vmem>>, %arg14: memref<8x8xf32, #tpu.memory_space<vmem>>, %arg15: memref<1x8xf32, #tpu.memory_space<vmem>>, %arg16: memref<8x8xf32, #tpu.memory_space<vmem>>, %arg17: memref<8x8xf32, #tpu.memory_space<vmem>>, %arg18: memref<1x8xf32, #tpu.memory_space<vmem>>, %arg19: memref<8x32xf32, #tpu.memory_space<vmem>>, %arg20: memref<1x32xf32, #tpu.memory_space<vmem>>, %arg21: memref<8x32xf32, #tpu.memory_space<vmem>>, %arg22: memref<1x32xf32, #tpu.memory_space<vmem>>, %arg23: memref<16x32xf32, #tpu.memory_space<vmem>>, %arg24: memref<24x32xf32, #tpu.memory_space<vmem>>) attributes {dimension_semantics = [], scalar_prefetch = 0 : i64, scratch_operands = 0 : i64, tpu.core_type = #tpu.core_type<tc>} {
    %c0 = arith.constant 0 : index
    %c0_0 = arith.constant 0 : index
    %0 = vector.load %arg0[%c0, %c0_0] : memref<16x32xf32, #tpu.memory_space<vmem>>, vector<16x32xf32>
    %c0_1 = arith.constant 0 : index
    %c0_2 = arith.constant 0 : index
    %1 = vector.load %arg1[%c0_1, %c0_2] : memref<24x32xf32, #tpu.memory_space<vmem>>, vector<24x32xf32>
    %c0_3 = arith.constant 0 : index
    %c0_4 = arith.constant 0 : index
    %2 = vector.load %arg5[%c0_3, %c0_4] : memref<32x8xf32, #tpu.memory_space<vmem>>, vector<32x8xf32>
    %cst = arith.constant dense<0.000000e+00> : vector<16x8xf32>
    %3 = tpu.matmul %0, %2, %cst {dimension_numbers = #tpu.dot_dimension_numbers<[1], [0], [0], [1], [0, 0, 1, 1], [], []>} : vector<16x32xf32>, vector<32x8xf32>, vector<16x8xf32> -> vector<16x8xf32>
    %c0_5 = arith.constant 0 : index
    %c0_6 = arith.constant 0 : index
    %4 = vector.load %arg6[%c0_5, %c0_6] : memref<1x8xf32, #tpu.memory_space<vmem>>, vector<1x8xf32>
    %5 = vector.broadcast %4 : vector<1x8xf32> to vector<16x8xf32>
    %6 = arith.addf %3, %5 : vector<16x8xf32>
    %cst_7 = arith.constant 0.000000e+00 : f32
    %7 = vector.broadcast %cst_7 : f32 to vector<16x8xf32>
    %8 = arith.cmpf ogt, %6, %7 : vector<16x8xf32>
    %cst_8 = arith.constant 0.000000e+00 : f32
    %9 = vector.broadcast %cst_8 : f32 to vector<16x8xf32>
    %10 = arith.minimumf %6, %9 : vector<16x8xf32>
    %11 = math.exp %10 : vector<16x8xf32>
    %cst_9 = arith.constant 1.000000e+00 : f32
    %12 = vector.broadcast %cst_9 : f32 to vector<16x8xf32>
    %13 = arith.subf %11, %12 : vector<16x8xf32>
    %14 = arith.select %8, %6, %13 : vector<16x8xi1>, vector<16x8xf32>
    %c0_10 = arith.constant 0 : index
    %c0_11 = arith.constant 0 : index
    %15 = vector.load %arg7[%c0_10, %c0_11] : memref<32x8xf32, #tpu.memory_space<vmem>>, vector<32x8xf32>
    %cst_12 = arith.constant dense<0.000000e+00> : vector<24x8xf32>
    %16 = tpu.matmul %1, %15, %cst_12 {dimension_numbers = #tpu.dot_dimension_numbers<[1], [0], [0], [1], [0, 0, 1, 1], [], []>} : vector<24x32xf32>, vector<32x8xf32>, vector<24x8xf32> -> vector<24x8xf32>
    %c0_13 = arith.constant 0 : index
    %c0_14 = arith.constant 0 : index
    %17 = vector.load %arg8[%c0_13, %c0_14] : memref<1x8xf32, #tpu.memory_space<vmem>>, vector<1x8xf32>
    %18 = vector.broadcast %17 : vector<1x8xf32> to vector<24x8xf32>
    %19 = arith.addf %16, %18 : vector<24x8xf32>
    %cst_15 = arith.constant 0.000000e+00 : f32
    %20 = vector.broadcast %cst_15 : f32 to vector<24x8xf32>
    %21 = arith.cmpf ogt, %19, %20 : vector<24x8xf32>
    %cst_16 = arith.constant 0.000000e+00 : f32
    %22 = vector.broadcast %cst_16 : f32 to vector<24x8xf32>
    %23 = arith.minimumf %19, %22 : vector<24x8xf32>
    %24 = math.exp %23 : vector<24x8xf32>
    %cst_17 = arith.constant 1.000000e+00 : f32
    %25 = vector.broadcast %cst_17 : f32 to vector<24x8xf32>
    %26 = arith.subf %24, %25 : vector<24x8xf32>
    %27 = arith.select %21, %19, %26 : vector<24x8xi1>, vector<24x8xf32>
    %28 = tpu.iota {dimensions = array<i32: 1>} : vector<24x16xi32>
    %c0_18 = arith.constant 0 : index
    %c0_19 = arith.constant 0 : index
    %29 = vector.load %arg2[%c0_18, %c0_19] : memref<24x1xi32, #tpu.memory_space<vmem>>, vector<24x1xi32>
    %30 = vector.broadcast %29 : vector<24x1xi32> to vector<24x16xi32>
    %31 = arith.cmpi eq, %30, %28 : vector<24x16xi32>
    %32 = arith.extui %31 : vector<24x16xi1> to vector<24x16xi32>
    %33 = arith.sitofp %32 : vector<24x16xi32> to vector<24x16xf32>
    %c0_20 = arith.constant 0 : index
    %c0_21 = arith.constant 0 : index
    %34 = vector.load %arg3[%c0_20, %c0_21] : memref<24x1xi32, #tpu.memory_space<vmem>>, vector<24x1xi32>
    %35 = vector.broadcast %34 : vector<24x1xi32> to vector<24x16xi32>
    %36 = arith.cmpi eq, %35, %28 : vector<24x16xi32>
    %37 = arith.extui %36 : vector<24x16xi1> to vector<24x16xi32>
    %38 = arith.sitofp %37 : vector<24x16xi32> to vector<24x16xf32>
    %39 = tpu.iota {dimensions = array<i32: 0>} : vector<16x24xi32>
    %c0_22 = arith.constant 0 : index
    %c0_23 = arith.constant 0 : index
    %40 = vector.load %arg4[%c0_22, %c0_23] : memref<1x24xi32, #tpu.memory_space<vmem>>, vector<1x24xi32>
    %41 = vector.broadcast %40 : vector<1x24xi32> to vector<16x24xi32>
    %42 = arith.cmpi eq, %41, %39 : vector<16x24xi32>
    %43 = arith.extui %42 : vector<16x24xi1> to vector<16x24xi32>
    %44 = arith.sitofp %43 : vector<16x24xi32> to vector<16x24xf32>
    %cst_24 = arith.constant dense<0.000000e+00> : vector<24x8xf32>
    %45 = tpu.matmul %33, %14, %cst_24 {dimension_numbers = #tpu.dot_dimension_numbers<[1], [0], [0], [1], [0, 0, 1, 1], [], []>} : vector<24x16xf32>, vector<16x8xf32>, vector<24x8xf32> -> vector<24x8xf32>
    %cst_25 = arith.constant dense<0.000000e+00> : vector<24x8xf32>
    %46 = tpu.matmul %38, %14, %cst_25 {dimension_numbers = #tpu.dot_dimension_numbers<[1], [0], [0], [1], [0, 0, 1, 1], [], []>} : vector<24x16xf32>, vector<16x8xf32>, vector<24x8xf32> -> vector<24x8xf32>
    %c0_26 = arith.constant 0 : index
    %c0_27 = arith.constant 0 : index
    %47 = vector.load %arg9[%c0_26, %c0_27] : memref<8x8xf32, #tpu.memory_space<vmem>>, vector<8x8xf32>
    %cst_28 = arith.constant dense<0.000000e+00> : vector<24x8xf32>
    %48 = tpu.matmul %45, %47, %cst_28 {dimension_numbers = #tpu.dot_dimension_numbers<[1], [0], [0], [1], [0, 0, 1, 1], [], []>} : vector<24x8xf32>, vector<8x8xf32>, vector<24x8xf32> -> vector<24x8xf32>
    %c0_29 = arith.constant 0 : index
    %c0_30 = arith.constant 0 : index
    %49 = vector.load %arg10[%c0_29, %c0_30] : memref<8x8xf32, #tpu.memory_space<vmem>>, vector<8x8xf32>
    %cst_31 = arith.constant dense<0.000000e+00> : vector<24x8xf32>
    %50 = tpu.matmul %46, %49, %cst_31 {dimension_numbers = #tpu.dot_dimension_numbers<[1], [0], [0], [1], [0, 0, 1, 1], [], []>} : vector<24x8xf32>, vector<8x8xf32>, vector<24x8xf32> -> vector<24x8xf32>
    %51 = arith.addf %48, %50 : vector<24x8xf32>
    %c0_32 = arith.constant 0 : index
    %c0_33 = arith.constant 0 : index
    %52 = vector.load %arg11[%c0_32, %c0_33] : memref<8x8xf32, #tpu.memory_space<vmem>>, vector<8x8xf32>
    %cst_34 = arith.constant dense<0.000000e+00> : vector<24x8xf32>
    %53 = tpu.matmul %27, %52, %cst_34 {dimension_numbers = #tpu.dot_dimension_numbers<[1], [0], [0], [1], [0, 0, 1, 1], [], []>} : vector<24x8xf32>, vector<8x8xf32>, vector<24x8xf32> -> vector<24x8xf32>
    %54 = arith.addf %51, %53 : vector<24x8xf32>
    %c0_35 = arith.constant 0 : index
    %c0_36 = arith.constant 0 : index
    %55 = vector.load %arg12[%c0_35, %c0_36] : memref<1x8xf32, #tpu.memory_space<vmem>>, vector<1x8xf32>
    %56 = vector.broadcast %55 : vector<1x8xf32> to vector<24x8xf32>
    %57 = arith.addf %54, %56 : vector<24x8xf32>
    %cst_37 = arith.constant 0.000000e+00 : f32
    %58 = vector.broadcast %cst_37 : f32 to vector<24x8xf32>
    %59 = arith.cmpf ogt, %57, %58 : vector<24x8xf32>
    %cst_38 = arith.constant 0.000000e+00 : f32
    %60 = vector.broadcast %cst_38 : f32 to vector<24x8xf32>
    %61 = arith.minimumf %57, %60 : vector<24x8xf32>
    %62 = math.exp %61 : vector<24x8xf32>
    %cst_39 = arith.constant 1.000000e+00 : f32
    %63 = vector.broadcast %cst_39 : f32 to vector<24x8xf32>
    %64 = arith.subf %62, %63 : vector<24x8xf32>
    %65 = arith.select %59, %57, %64 : vector<24x8xi1>, vector<24x8xf32>
    %c0_40 = arith.constant 0 : index
    %c0_41 = arith.constant 0 : index
    %66 = vector.load %arg13[%c0_40, %c0_41] : memref<8x8xf32, #tpu.memory_space<vmem>>, vector<8x8xf32>
    %cst_42 = arith.constant dense<0.000000e+00> : vector<24x8xf32>
    %67 = tpu.matmul %45, %66, %cst_42 {dimension_numbers = #tpu.dot_dimension_numbers<[1], [0], [0], [1], [0, 0, 1, 1], [], []>} : vector<24x8xf32>, vector<8x8xf32>, vector<24x8xf32> -> vector<24x8xf32>
    %c0_43 = arith.constant 0 : index
    %c0_44 = arith.constant 0 : index
    %68 = vector.load %arg14[%c0_43, %c0_44] : memref<8x8xf32, #tpu.memory_space<vmem>>, vector<8x8xf32>
    %cst_45 = arith.constant dense<0.000000e+00> : vector<24x8xf32>
    %69 = tpu.matmul %65, %68, %cst_45 {dimension_numbers = #tpu.dot_dimension_numbers<[1], [0], [0], [1], [0, 0, 1, 1], [], []>} : vector<24x8xf32>, vector<8x8xf32>, vector<24x8xf32> -> vector<24x8xf32>
    %70 = arith.addf %67, %69 : vector<24x8xf32>
    %c0_46 = arith.constant 0 : index
    %c0_47 = arith.constant 0 : index
    %71 = vector.load %arg15[%c0_46, %c0_47] : memref<1x8xf32, #tpu.memory_space<vmem>>, vector<1x8xf32>
    %72 = vector.broadcast %71 : vector<1x8xf32> to vector<24x8xf32>
    %73 = arith.addf %70, %72 : vector<24x8xf32>
    %cst_48 = arith.constant 0.000000e+00 : f32
    %74 = vector.broadcast %cst_48 : f32 to vector<24x8xf32>
    %75 = arith.cmpf ogt, %73, %74 : vector<24x8xf32>
    %cst_49 = arith.constant 0.000000e+00 : f32
    %76 = vector.broadcast %cst_49 : f32 to vector<24x8xf32>
    %77 = arith.minimumf %73, %76 : vector<24x8xf32>
    %78 = math.exp %77 : vector<24x8xf32>
    %cst_50 = arith.constant 1.000000e+00 : f32
    %79 = vector.broadcast %cst_50 : f32 to vector<24x8xf32>
    %80 = arith.subf %78, %79 : vector<24x8xf32>
    %81 = arith.select %75, %73, %80 : vector<24x8xi1>, vector<24x8xf32>
    %cst_51 = arith.constant dense<0.000000e+00> : vector<16x8xf32>
    %82 = tpu.matmul %44, %81, %cst_51 {dimension_numbers = #tpu.dot_dimension_numbers<[1], [0], [0], [1], [0, 0, 1, 1], [], []>} : vector<16x24xf32>, vector<24x8xf32>, vector<16x8xf32> -> vector<16x8xf32>
    %cst_52 = arith.constant dense<0.000000e+00> : vector<16xf32>
    %83 = vector.multi_reduction <add>, %44, %cst_52 [1] : vector<16x24xf32> to vector<16xf32>
    %84 = vector.shape_cast %83 : vector<16xf32> to vector<16x1xf32>
    %cst_53 = arith.constant 1.000000e+00 : f32
    %85 = vector.broadcast %cst_53 : f32 to vector<16x1xf32>
    %86 = arith.maximumf %84, %85 : vector<16x1xf32>
    %87 = vector.broadcast %86 : vector<16x1xf32> to vector<16x8xf32>
    %88 = arith.divf %82, %87 : vector<16x8xf32>
    %c0_54 = arith.constant 0 : index
    %c0_55 = arith.constant 0 : index
    %89 = vector.load %arg16[%c0_54, %c0_55] : memref<8x8xf32, #tpu.memory_space<vmem>>, vector<8x8xf32>
    %cst_56 = arith.constant dense<0.000000e+00> : vector<16x8xf32>
    %90 = tpu.matmul %14, %89, %cst_56 {dimension_numbers = #tpu.dot_dimension_numbers<[1], [0], [0], [1], [0, 0, 1, 1], [], []>} : vector<16x8xf32>, vector<8x8xf32>, vector<16x8xf32> -> vector<16x8xf32>
    %c0_57 = arith.constant 0 : index
    %c0_58 = arith.constant 0 : index
    %91 = vector.load %arg17[%c0_57, %c0_58] : memref<8x8xf32, #tpu.memory_space<vmem>>, vector<8x8xf32>
    %cst_59 = arith.constant dense<0.000000e+00> : vector<16x8xf32>
    %92 = tpu.matmul %88, %91, %cst_59 {dimension_numbers = #tpu.dot_dimension_numbers<[1], [0], [0], [1], [0, 0, 1, 1], [], []>} : vector<16x8xf32>, vector<8x8xf32>, vector<16x8xf32> -> vector<16x8xf32>
    %93 = arith.addf %90, %92 : vector<16x8xf32>
    %c0_60 = arith.constant 0 : index
    %c0_61 = arith.constant 0 : index
    %94 = vector.load %arg18[%c0_60, %c0_61] : memref<1x8xf32, #tpu.memory_space<vmem>>, vector<1x8xf32>
    %95 = vector.broadcast %94 : vector<1x8xf32> to vector<16x8xf32>
    %96 = arith.addf %93, %95 : vector<16x8xf32>
    %cst_62 = arith.constant 0.000000e+00 : f32
    %97 = vector.broadcast %cst_62 : f32 to vector<16x8xf32>
    %98 = arith.cmpf ogt, %96, %97 : vector<16x8xf32>
    %cst_63 = arith.constant 0.000000e+00 : f32
    %99 = vector.broadcast %cst_63 : f32 to vector<16x8xf32>
    %100 = arith.minimumf %96, %99 : vector<16x8xf32>
    %101 = math.exp %100 : vector<16x8xf32>
    %cst_64 = arith.constant 1.000000e+00 : f32
    %102 = vector.broadcast %cst_64 : f32 to vector<16x8xf32>
    %103 = arith.subf %101, %102 : vector<16x8xf32>
    %104 = arith.select %98, %96, %103 : vector<16x8xi1>, vector<16x8xf32>
    %c0_65 = arith.constant 0 : index
    %c0_66 = arith.constant 0 : index
    %105 = vector.load %arg19[%c0_65, %c0_66] : memref<8x32xf32, #tpu.memory_space<vmem>>, vector<8x32xf32>
    %cst_67 = arith.constant dense<0.000000e+00> : vector<16x32xf32>
    %106 = tpu.matmul %104, %105, %cst_67 {dimension_numbers = #tpu.dot_dimension_numbers<[1], [0], [0], [1], [0, 0, 1, 1], [], []>} : vector<16x8xf32>, vector<8x32xf32>, vector<16x32xf32> -> vector<16x32xf32>
    %c0_68 = arith.constant 0 : index
    %c0_69 = arith.constant 0 : index
    %107 = vector.load %arg20[%c0_68, %c0_69] : memref<1x32xf32, #tpu.memory_space<vmem>>, vector<1x32xf32>
    %108 = vector.broadcast %107 : vector<1x32xf32> to vector<16x32xf32>
    %109 = arith.addf %106, %108 : vector<16x32xf32>
    %110 = arith.addf %109, %0 : vector<16x32xf32>
    %cst_70 = arith.constant 0.000000e+00 : f32
    %111 = vector.broadcast %cst_70 : f32 to vector<16x32xf32>
    %112 = arith.cmpf ogt, %110, %111 : vector<16x32xf32>
    %cst_71 = arith.constant 0.000000e+00 : f32
    %113 = vector.broadcast %cst_71 : f32 to vector<16x32xf32>
    %114 = arith.minimumf %110, %113 : vector<16x32xf32>
    %115 = math.exp %114 : vector<16x32xf32>
    %cst_72 = arith.constant 1.000000e+00 : f32
    %116 = vector.broadcast %cst_72 : f32 to vector<16x32xf32>
    %117 = arith.subf %115, %116 : vector<16x32xf32>
    %118 = arith.select %112, %110, %117 : vector<16x32xi1>, vector<16x32xf32>
    %c0_73 = arith.constant 0 : index
    %c0_74 = arith.constant 0 : index
    %119 = vector.load %arg23[%c0_73, %c0_74] : memref<16x32xf32, #tpu.memory_space<vmem>>, vector<16x32xf32>
    tpu.vector_store %arg23[%c0_73, %c0_74], %118 {strides = array<i32>} : memref<16x32xf32, #tpu.memory_space<vmem>>, vector<16x32xf32>,
    %c0_75 = arith.constant 0 : index
    %c0_76 = arith.constant 0 : index
    %120 = vector.load %arg21[%c0_75, %c0_76] : memref<8x32xf32, #tpu.memory_space<vmem>>, vector<8x32xf32>
    %cst_77 = arith.constant dense<0.000000e+00> : vector<24x32xf32>
    %121 = tpu.matmul %65, %120, %cst_77 {dimension_numbers = #tpu.dot_dimension_numbers<[1], [0], [0], [1], [0, 0, 1, 1], [], []>} : vector<24x8xf32>, vector<8x32xf32>, vector<24x32xf32> -> vector<24x32xf32>
    %c0_78 = arith.constant 0 : index
    %c0_79 = arith.constant 0 : index
    %122 = vector.load %arg22[%c0_78, %c0_79] : memref<1x32xf32, #tpu.memory_space<vmem>>, vector<1x32xf32>
    %123 = vector.broadcast %122 : vector<1x32xf32> to vector<24x32xf32>
    %124 = arith.addf %121, %123 : vector<24x32xf32>
    %125 = arith.addf %124, %1 : vector<24x32xf32>
    %cst_80 = arith.constant 0.000000e+00 : f32
    %126 = vector.broadcast %cst_80 : f32 to vector<24x32xf32>
    %127 = arith.cmpf ogt, %125, %126 : vector<24x32xf32>
    %cst_81 = arith.constant 0.000000e+00 : f32
    %128 = vector.broadcast %cst_81 : f32 to vector<24x32xf32>
    %129 = arith.minimumf %125, %128 : vector<24x32xf32>
    %130 = math.exp %129 : vector<24x32xf32>
    %cst_82 = arith.constant 1.000000e+00 : f32
    %131 = vector.broadcast %cst_82 : f32 to vector<24x32xf32>
    %132 = arith.subf %130, %131 : vector<24x32xf32>
    %133 = arith.select %127, %125, %132 : vector<24x32xi1>, vector<24x32xf32>
    %c0_83 = arith.constant 0 : index
    %c0_84 = arith.constant 0 : index
    %134 = vector.load %arg24[%c0_83, %c0_84] : memref<24x32xf32, #tpu.memory_space<vmem>>, vector<24x32xf32>
    tpu.vector_store %arg24[%c0_83, %c0_84], %133 {strides = array<i32>} : memref<24x32xf32, #tpu.memory_space<vmem>>, vector<24x32xf32>,
    return
  }
}

</mosaic_0001>

<bundles_post_ra>
// kernel: tpu_custom_call.1
= control target key start
LH: loop header
LB: loop body
LE: loop exit
PB: predicated region body
PF: predicated region fallthrough
CT: control target
= control target key end

     0   :  { %s2400_s0 = inlined_call_operand.vmem [shape: f32[16,32], index: 0, kind: input, shape index: {}]   ;;  %s2401_s1 = inlined_call_operand.vmem [shape: f32[24,32], index: 1, kind: input, shape index: {}]   ;;  %s2402_s2 = inlined_call_operand.vmem [shape: s32[24,1], index: 2, kind: input, shape index: {}]   ;;  %s2403_s3 = inlined_call_operand.vmem [shape: s32[24,1], index: 3, kind: input, shape index: {}]   ;;  %s2404_s4 = inlined_call_operand.vmem [shape: s32[1,24], index: 4, kind: input, shape index: {}]   ;;  %s2405_s5 = inlined_call_operand.vmem [shape: f32[32,8], index: 5, kind: input, shape index: {}]   ;;  %s2406_s6 = inlined_call_operand.vmem [shape: f32[1,8], index: 6, kind: input, shape index: {}]   ;;  %s2407_s7 = inlined_call_operand.vmem [shape: f32[32,8], index: 7, kind: input, shape index: {}]   ;;  %s2408_s8 = inlined_call_operand.vmem [shape: f32[1,8], index: 8, kind: input, shape index: {}]   ;;  %s2409_s9 = inlined_call_operand.vmem [shape: f32[8,8], index: 9, kind: input, shape index: {}]   ;;  %s2410_s10 = inlined_call_operand.vmem [shape: f32[8,8], index: 10, kind: input, shape index: {}]   ;;  %s2411_s11 = inlined_call_operand.vmem [shape: f32[8,8], index: 11, kind: input, shape index: {}]   ;;  %s2412_s12 = inlined_call_operand.vmem [shape: f32[1,8], index: 12, kind: input, shape index: {}]   ;;  %s2413_s13 = inlined_call_operand.vmem [shape: f32[8,8], index: 13, kind: input, shape index: {}]   ;;  %s2414_s14 = inlined_call_operand.vmem [shape: f32[8,8], index: 14, kind: input, shape index: {}]   ;;  %s2415_s15 = inlined_call_operand.vmem [shape: f32[1,8], index: 15, kind: input, shape index: {}]   ;;  %s2416_s16 = inlined_call_operand.vmem [shape: f32[8,8], index: 16, kind: input, shape index: {}]   ;;  %s2417_s17 = inlined_call_operand.vmem [shape: f32[8,8], index: 17, kind: input, shape index: {}]   ;;  %s2418_s18 = inlined_call_operand.vmem [shape: f32[1,8], index: 18, kind: input, shape index: {}]   ;;  %s2419_s19 = inlined_call_operand.vmem [shape: f32[8,32], index: 19, kind: input, shape index: {}]   ;;  %s2420_s20 = inlined_call_operand.vmem [shape: f32[1,32], index: 20, kind: input, shape index: {}]   ;;  %s2421_s21 = inlined_call_operand.vmem [shape: f32[8,32], index: 21, kind: input, shape index: {}]   ;;  %s2422_s22 = inlined_call_operand.vmem [shape: f32[1,32], index: 22, kind: input, shape index: {}]   ;;  %s2423_s23 = inlined_call_operand.hbm [shape: f32[16,32], index: 23, kind: output, shape index: {0}]   ;;  %s2424_s24 = inlined_call_operand.hbm [shape: f32[24,32], index: 24, kind: output, shape index: {1}]  }
   0x1   :  { %2431 = sst [smem:[#allocation8_spill]] %s2400_s0 }
   0x2   :  { %2432 = sst [smem:[#allocation9_spill]] %s2401_s1 }
   0x3   :  { %2433 = sst [smem:[#allocation10_spill]] %s2402_s2 }
   0x4   :  { %2434 = sst [smem:[#allocation11_spill]] %s2403_s3 }
   0x5   :  { %2435 = sst [smem:[#allocation12_spill]] %s2404_s4 }
   0x6   :  { %2436 = sst [smem:[#allocation13_spill]] %s2405_s5 }
   0x7   :  { %2437 = sst [smem:[#allocation14_spill]] %s2406_s6 }
   0x8   :  { %2438 = sst [smem:[#allocation15_spill]] %s2407_s7 }
   0x9   :  { %2439 = sst [smem:[#allocation16_spill]] %s2408_s8 }
   0xa   :  { %30 = vsyncpa [#allocation3], 0  ;;  %s2440_s27 = sld [smem:[#allocation13_spill]]  ;;  %vm94_vm0 = vcmask 261120   ;;  %s2441_s25 = sld [smem:[#allocation8_spill]]  ;;  %v1974_v6 = vmov 0  }
   0xb   :  { %1884 = vset.pattern.permute.xlu0 %v1974_v6  ;;  %1885 = vset.pattern.permute.xlu1 %v1974_v6  ;;  %s2442_s1 = sld [smem:[#allocation10_spill]] }
  0x10   :  { %v83_v0 = vld [vmem:[%s2440_s27] sm:$0xff]  ;;  %v84_v1 = vld [vmem:[%s2440_s27 + $0x8] sm:$0xff]  ;;  %v85_v2 = vld [vmem:[%s2440_s27 + $0x10] sm:$0xff] }
  0x11   :  { %v1848_v3 = vpack.c.bf16 %v84_v1, %v83_v0  ;;  %v86_v4 = vld [vmem:[%s2440_s27 + $0x18] sm:$0xff]  ;;  %v2122_v5 = vld [vmem:[%s2441_s25] sm:$0xff]  ;;  %v310_v9 = vld [vmem:[%s2442_s1 + $0x10] sm:$0xff] }
  0x12   :  { %v1852_v7 = vpack.c.bf16 %v86_v4, %v85_v2  ;;  %1712 = vmatprep.mubr.msk.f32.mxu0 %vm94_vm0, %v2122_v5  ;;  %v308_v8 = vld [vmem:[%s2442_s1] sm:$0xff]  ;;  %v309_v10 = vld [vmem:[%s2442_s1 + $0x8] sm:$0xff]  ;;  %318 = vperm.xlu1 %1885, %v310_v9  }
  0x13   :  { %1849 = vmatprep.subr.bf16.mxu0 %v1848_v3  ;;  %312 = vperm.xlu0 %1884, %v308_v8  }
  0x14   :  { %1851 = vmatpush3.bf16.msra.mxu0 %v1848_v3 }
  0x15   :  { %31 = vsyncpa [#allocation5], 0  ;;  %1853 = vmatprep.subr.bf16.mxu0 %v1852_v7  ;;  %s2443_s29 = sld [smem:[#allocation11_spill]]  ;;  %v2141_v12 = vld [vmem:[%s2441_s25 + $0x8] sm:$0xff]  ;;  %s2444_s26 = sld [smem:[#allocation15_spill]]  ;;  %v1975_v18 = vmov 0.0|0.0   ;;  %v306_v38 = vlaneseq }
  0x16   :  { %1856 = vmatprep.subr.bf16.mxu1 %v1975_v18  ;;  %vm1976_vm1 = vmmov 0   ;;  %v1977_v22 = vmov 0.0   ;;  %s2445_s30 = sld [smem:[#allocation9_spill]]  ;;  %s2446_s25 = sld [smem:[#allocation14_spill]]  ;;  %vm364_vm6 = vcmask 130048   ;;  %v543_v62 = vld [vmem:[%s2409_s9] sm:$0xff] }
  0x17   :  { %315 = vperm.xlu0 %1884, %v309_v10   ;;  %1723 = vmatprep.mubr.msk.f32.mxu1 %vm1976_vm1, %v1977_v22  ;;  %v307_v41 = vand.u32 127, %v306_v38  ;;  %v544_v63 = vld [vmem:[%s2410_s10] sm:$0xff]  ;;  %s2447_s7 = sld [smem:[#allocation16_spill]]  ;;  %vm545_vm11 = vcmask 64512   ;;  %s2448_s1 = sld [smem:[#allocation12_spill]] }
  0x18   :  { %1855 = vmatpush3.bf16.msra.mxu0 %v1852_v7 }
  0x19   :  { %1862 = vmatprep.subr.bf16.mxu0 %v1975_v18 }
  0x1b   :  { %v329_v11 = vld [vmem:[%s2443_s29] sm:$0xff]  ;;  %v330_v13 = vld [vmem:[%s2443_s29 + $0x8] sm:$0xff]  ;;  %v331_v14 = vld [vmem:[%s2443_s29 + $0x10] sm:$0xff]  ;;  %1713 = vmatmul.mubr.msk.f32.vlgmr.msra.gmra.mrb[0].mxu0 %vm94_vm0, %v2141_v12 }
  0x1c   :  { %333 = vperm.xlu1 %1885, %v329_v11   ;;  %336 = vperm.xlu0 %1884, %v330_v13   ;;  %v188_v15 = vld [vmem:[%s2444_s26] sm:$0xff]  ;;  %v189_v16 = vld [vmem:[%s2444_s26 + $0x8] sm:$0xff]  ;;  %v190_v19 = vld [vmem:[%s2444_s26 + $0x10] sm:$0xff] }
  0x1d   :  { %v1857_v17 = vpack.c.bf16 %v189_v16, %v188_v15  ;;  %v191_v20 = vld [vmem:[%s2444_s26 + $0x18] sm:$0xff]  ;;  %v2168_v23 = vld [vmem:[%s2445_s30] sm:$0xff]  ;;  %1736 = vmatprep.mubr.msk.f32.mxu0 %vm1976_vm1, %v1977_v22  ;;  %v2179_v24 = vld [vmem:[%s2445_s30 + $0x8] sm:$0xff] }
  0x1e   :  { %v1860_v21 = vpack.c.bf16 %v191_v20, %v190_v19  ;;  %v2188_v25 = vld [vmem:[%s2445_s30 + $0x10] sm:$0xff]  ;;  %v1572_v26 = vld [vmem:[%s2446_s25] ss:$0 sm:$0xff] }
  0x1f   :  { %1858 = vmatpush3.bf16.msra.mxu1 %v1857_v17  ;;  %v1577_v0 = vld [vmem:[%s2447_s7] ss:$0 sm:$0xff] }
  0x20   :  { %339 = vperm.xlu1 %1885, %v331_v14   ;;  %1859 = vmatprep.subr.bf16.mxu1 %v1975_v18 }
  0x23   :  { %1861 = vmatpush3.bf16.msra.mxu1 %v1860_v21 }
  0x24   :  { %1872 = vmatprep.subr.bf16.mxu1 %v1975_v18 }
  0x26   :  { %1724 = vmatmul.mubr.msk.f32.vlgmr.msra.gmra.mrb[0].mxu1 %vm94_vm0, %v2168_v23 }
  0x27   :  { %1726 = vmatprep.mubr.msk.f32.mxu1 %vm1976_vm1, %v1977_v22 }
  0x2a   :  { %1727 = vmatmul.mubr.msk.f32.gmra.mrb[2].mxu1 %vm94_vm0, %v2179_v24 }
  0x2b   :  { %1729 = vmatprep.mubr.msk.f32.mxu1 %vm1976_vm1, %v1977_v22 }
  0x2e   :  { %1730 = vmatmul.mubr.msk.f32.gmra.mrb[4].mxu1 %vm94_vm0, %v2188_v25 }
  0x2f   :  { %1752 = vmatprep.mubr.msk.f32.mxu1 %vm1976_vm1, %v1977_v22 }
  0x91   :  { %v319_v36 = vpop.permute.xlu1 %318 }
  0x92   :  { %v313_v35 = vpop.permute.xlu0 %312  ;;  %vm322_vm9 = vcmp.eq.s32.totalorder %v319_v36, %v307_v41 }
  0x93   :  { %vm320_vm4 = vcmp.eq.s32.totalorder %v313_v35, %v307_v41  ;;  %v1586_v54 = vsel %vm322_vm9, 1.0, %v1977_v22 }
  0x94   :  { %v1584_v50 = vsel %vm320_vm4, 1.0, %v1977_v22 }
  0x96   :  { %v316_v37 = vpop.permute.xlu0 %315 }
  0x97   :  { %vm321_vm8 = vcmp.eq.s32.totalorder %v316_v37, %v307_v41 }
  0x98   :  { %v1585_v53 = vsel %vm321_vm8, 1.0, %v1977_v22 }
  0x9b   :  { %v334_v39 = vpop.permute.xlu1 %333  ;;  %v337_v44 = vpop.permute.xlu0 %336 }
  0x9c   :  { %vm342_vm5 = vcmp.eq.s32.totalorder %v337_v44, %v307_v41  ;;  %vm341_vm10 = vcmp.eq.s32.totalorder %v334_v39, %v307_v41 }
  0x9d   :  { %v1588_v51 = vsel %vm342_vm5, 1.0, %v1977_v22  ;;  %v1587_v55 = vsel %vm341_vm10, 1.0, %v1977_v22 }
  0x9f   :  { %v340_v49 = vpop.permute.xlu1 %339 }
  0xa0   :  { %vm343_vm7 = vcmp.eq.s32.totalorder %v340_v49, %v307_v41 }
  0xa1   :  { %v1589_v52 = vsel %vm343_vm7, 1.0, %v1977_v22 }
  0xee   :  { %v1714_v27 = vpop.f32.mrb[0].mxu0 }
  0xef   :  { %v173_v28 = vadd.f32 %v1714_v27, %v1572_v26  ;;  %v167_v29 = vpop.f32.mrb[1].mxu0 }
  0xf0   :  { %v168_v30 = vadd.f32 %v1572_v26, %v167_v29  ;;  %v724_v26 = vld [vmem:[%s2411_s11] sm:$0xff] }
  0xf1   :  { %v179_v31 = vmin.f32 %v173_v28, 0.0  ;;  %vm177_vm2 = vcmp.gt.f32.partialorder %v173_v28, 0.0 }
  0xf2   :  { %v178_v32 = vmin.f32 %v168_v30, 0.0  ;;  %vm176_vm3 = vcmp.gt.f32.partialorder %v168_v30, 0.0 }
  0xf3   :  { %v182_v33 = vmul.f32 1.442695, %v179_v31 }
  0xf4   :  { %v180_v34 = vmul.f32 1.442695, %v178_v32  ;;  %v845_v32 = vld [vmem:[%s2413_s13] sm:$0xff] }
  0xf5   :  { %1886 = vpow2.f32 %v182_v33 }
  0xf6   :  { %1888 = vpow2.f32 %v180_v34 }
  0xf9   :  { %v274_v56 = vpop.f32.mrb[0].mxu1 }
  0xfa   :  { %v1725_v57 = vpop.f32.mrb[1].mxu1  ;;  %v275_v1 = vadd.f32 %v1577_v0, %v274_v56 }
  0xfc   :  { %v291_v2 = vmin.f32 %v275_v1, 0.0  ;;  %vm288_vm12 = vcmp.gt.f32.partialorder %v275_v1, 0.0 }
  0xfd   :  { %v279_v58 = vpop.f32.mrb[2].mxu1 }
  0xfe   :  { %v1728_v59 = vpop.f32.mrb[3].mxu1  ;;  %v280_v3 = vadd.f32 %v1577_v0, %v279_v58  ;;  %v294_v9 = vmul.f32 1.442695, %v291_v2 }
  0xff   :  { %v1887_v40 = vpop.eup %1886  ;;  %v1608_v59 = vld [vmem:[%s2412_s12] ss:$0 sm:$0xff] }
 0x100   :  { %v1889_v42 = vpop.eup %1888  ;;  %v1576_v43 = vadd.f32 -1.0, %v1887_v40  ;;  %v292_v10 = vmin.f32 %v280_v3, 0.0  ;;  %1890 = vpow2.f32 %v294_v9  ;;  %vm289_vm13 = vcmp.gt.f32.partialorder %v280_v3, 0.0  ;;  %v846_v40 = vld [vmem:[%s2414_s14] sm:$0xff] }
 0x101   :  { %v1575_v45 = vadd.f32 -1.0, %v1889_v42  ;;  %v284_v60 = vpop.f32.mrb[4].mxu1 }
 0x102   :  { %v2198_v46 = vsel %vm177_vm2, %v173_v28, %v1576_v43  ;;  %v1731_v61 = vpop.f32.mrb[5].mxu1  ;;  %v285_v11 = vadd.f32 %v1577_v0, %v284_v60  ;;  %v296_v17 = vmul.f32 1.442695, %v292_v10 }
 0x103   :  { %v2200_v47 = vsel %vm176_vm3, %v168_v30, %v1575_v45 }
 0x104   :  { %v1863_v48 = vpack.c.bf16 %v2198_v46, %v2200_v47  ;;  %1892 = vpow2.f32 %v296_v17  ;;  %vm290_vm14 = vcmp.gt.f32.partialorder %v285_v11, 0.0 }
 0x106   :  { %1864 = vmatpush3.bf16.msra.mxu0 %v1863_v48  ;;  %1873 = vmatpush3.bf16.msra.mxu1 %v1863_v48 }
 0x107   :  { %1865 = vmatprep.subr.bf16.mxu0 %v1975_v18  ;;  %1769 = vmatprep.subr.mxu1 %v1977_v22  ;;  %v293_v18 = vmin.f32 %v285_v11, 0.0 }
 0x109   :  { %1737 = vmatmul.mubr.msk.f32.vlgmr.msra.gmra.mrb[2].mxu0 %vm364_vm6, %v1584_v50  ;;  %1753 = vmatmul.mubr.msk.f32.vlgmr.msra.gmra.mrb[6].mxu1 %vm364_vm6, %v1588_v51  ;;  %v298_v21 = vmul.f32 1.442695, %v293_v18 }
 0x10a   :  { %1867 = vmatpush3.bf16.msra.mxu0 %v1863_v48  ;;  %1739 = vmatprep.mubr.msk.f32.mxu0 %vm1976_vm1, %v1977_v22  ;;  %v1891_v29 = vpop.eup %1890 }
 0x10b   :  { %1755 = vmatprep.mubr.msk.f32.mxu1 %vm1976_vm1, %v1977_v22  ;;  %1758 = vmatprep.subr.mxu0 %v1977_v22  ;;  %1894 = vpow2.f32 %v298_v21  ;;  %v1581_v30 = vadd.f32 -1.0, %v1891_v29 }
 0x10c   :  { %1770 = vmatpush3.msra.mxu1 %v543_v62 }
 0x10d   :  { %1740 = vmatmul.mubr.msk.f32.gmra.mrb[4].mxu0 %vm364_vm6, %v1585_v53  ;;  %1756 = vmatmul.mubr.msk.f32.gmra.mrb[8].mxu1 %vm364_vm6, %v1589_v52  ;;  %v303_v33 = vsel %vm288_vm12, %v275_v1, %v1581_v30 }
 0x10e   :  { %1742 = vmatprep.mubr.msk.f32.mxu0 %vm1976_vm1, %v1977_v22  ;;  %1771 = vmatprep.mubr.msk.f32.mxu1 %vm1976_vm1, %v1977_v22  ;;  %v1893_v31 = vpop.eup %1892 }
 0x10f   :  { %1791 = vmatprep.subr.mxu1 %v1977_v22  ;;  %v1582_v34 = vadd.f32 -1.0, %v1893_v31 }
 0x111   :  { %1743 = vmatmul.mubr.msk.f32.gmra.mrb[6].mxu0 %vm364_vm6, %v1586_v54  ;;  %v304_v36 = vsel %vm289_vm13, %v280_v3, %v1582_v34  ;;  %v351_v34 = vshrl.u32 %v306_v38, 7  ;;  %v1139_v38 = vld [vmem:[%s2417_s17] sm:$0xff] }
 0x112   :  { %1749 = vmatprep.mubr.msk.f32.mxu0 %vm1976_vm1, %v1977_v22 }
 0x115   :  { %1750 = vmatmul.mubr.msk.f32.vlgmr.msra.gmra.mrb[8].mxu0 %vm364_vm6, %v1587_v55  ;;  %v1895_v35 = vpop.eup %1894  ;;  %vm1044_vm6 = vcmask 195584  }
 0x116   :  { %1760 = vmatprep.mubr.msk.f32.mxu0 %vm1976_vm1, %v1977_v22  ;;  %1759 = vmatpush3.msra.mxu0 %v544_v63  ;;  %v1583_v37 = vadd.f32 -1.0, %v1895_v35  ;;  %v352_v35 = vadd.s32 8, %v351_v34 }
 0x117   :  { %1780 = vmatprep.subr.mxu0 %v1977_v22 }
 0x118   :  { %v305_v39 = vsel %vm290_vm14, %v285_v11, %v1583_v37 }
 0x1dc   :  { %v440_v4 = vpop.f32.mrb[2].mxu0  ;;  %v534_v6 = vpop.f32.mrb[6].mxu1 }
 0x1dd   :  { %v1738_v7 = vpop.f32.mrb[3].mxu0  ;;  %v1754_v8 = vpop.f32.mrb[7].mxu1  ;;  %1772 = vmatmul.mubr.msk.f32.vlgmr.msra.gmra.mrb[10].mxu1 %vm545_vm11, %v440_v4 }
 0x1de   :  { %1774 = vmatprep.mubr.msk.f32.mxu1 %vm1976_vm1, %v1977_v22  ;;  %1792 = vmatpush3.msra.mxu1 %v846_v40 }
 0x1e0   :  { %v445_v13 = vpop.f32.mrb[4].mxu0  ;;  %v539_v14 = vpop.f32.mrb[8].mxu1 }
 0x1e1   :  { %v1741_v15 = vpop.f32.mrb[5].mxu0  ;;  %1775 = vmatmul.mubr.msk.f32.gmra.mrb[12].mxu1 %vm545_vm11, %v445_v13  ;;  %v1757_v16 = vpop.f32.mrb[9].mxu1 }
 0x1e2   :  { %1777 = vmatprep.mubr.msk.f32.mxu1 %vm1976_vm1, %v1977_v22 }
 0x1e4   :  { %v450_v19 = vpop.f32.mrb[6].mxu0 }
 0x1e5   :  { %v1744_v20 = vpop.f32.mrb[7].mxu0  ;;  %1778 = vmatmul.mubr.msk.f32.gmra.mrb[14].mxu1 %vm545_vm11, %v450_v19 }
 0x1e6   :  { %1793 = vmatprep.mubr.msk.f32.mxu1 %vm1976_vm1, %v1977_v22 }
 0x1e8   :  { %v529_v27 = vpop.f32.mrb[8].mxu0 }
 0x1e9   :  { %v1751_v28 = vpop.f32.mrb[9].mxu0  ;;  %1761 = vmatmul.mubr.msk.f32.vlgmr.msra.gmra.mrb[10].mxu0 %vm545_vm11, %v529_v27 }
 0x1ea   :  { %1763 = vmatprep.mubr.msk.f32.mxu0 %vm1976_vm1, %v1977_v22  ;;  %1781 = vmatpush3.msra.mxu0 %v724_v26 }
 0x1eb   :  { %1802 = vmatprep.subr.mxu0 %v1977_v22 }
 0x1ed   :  { %1764 = vmatmul.mubr.msk.f32.gmra.mrb[12].mxu0 %vm545_vm11, %v534_v6 }
 0x1ee   :  { %1766 = vmatprep.mubr.msk.f32.mxu0 %vm1976_vm1, %v1977_v22 }
 0x1f1   :  { %1767 = vmatmul.mubr.msk.f32.gmra.mrb[14].mxu0 %vm545_vm11, %v539_v14 }
 0x1f2   :  { %1782 = vmatprep.mubr.msk.f32.mxu0 %vm1976_vm1, %v1977_v22 }
 0x1f5   :  { %1783 = vmatmul.mubr.msk.f32.vlgmr.msra.gmra.mrb[16].mxu0 %vm545_vm11, %v303_v33 }
 0x1f6   :  { %1785 = vmatprep.mubr.msk.f32.mxu0 %vm1976_vm1, %v1977_v22  ;;  %1803 = vmatpush3.msra.mxu0 %v845_v32 }
 0x1f7   :  { %1822 = vmatprep.subr.mxu0 %v1139_v38 }
 0x1f9   :  { %1786 = vmatmul.mubr.msk.f32.gmra.mrb[18].mxu0 %vm545_vm11, %v304_v36  ;;  %v1590_v36 = vld [vmem:[%s2448_s1] ss:$0 sm:$0xff] }
 0x1fa   :  { %1788 = vmatprep.mubr.msk.f32.mxu0 %vm1976_vm1, %v1977_v22  ;;  %vm358_vm4 = vcmp.eq.s32.totalorder %v1590_v36, %v351_v34  ;;  %vm359_vm5 = vcmp.eq.s32.totalorder %v1590_v36, %v352_v35 }
 0x1fb   :  { %v1591_v37 = vsel %vm358_vm4, 1.0, %v1977_v22 }
 0x1fc   :  { %v1126_v40 = vsel %vm1044_vm6, %v1591_v37, 0.0 }
 0x1fd   :  { %1789 = vmatmul.mubr.msk.f32.gmra.mrb[20].mxu0 %vm545_vm11, %v305_v39  ;;  %v1592_v39 = vsel %vm359_vm5, 1.0, %v1977_v22  ;;  %1127 = vadd.xlane.f32.xlu0 %v1126_v40 }
 0x1fe   :  { %1804 = vmatprep.mubr.msk.f32.mxu0 %vm1976_vm1, %v1977_v22 }
 0x201   :  { %1805 = vmatmul.mubr.msk.f32.vlgmr.msra.gmra.mrb[22].mxu0 %vm545_vm11, %v440_v4 }
 0x202   :  { %1807 = vmatprep.mubr.msk.f32.mxu0 %vm1976_vm1, %v1977_v22  ;;  %1823 = vmatpush3.msra.mxu0 %v1139_v38 }
 0x205   :  { %1808 = vmatmul.mubr.msk.f32.gmra.mrb[24].mxu0 %vm545_vm11, %v445_v13 }
 0x206   :  { %1810 = vmatprep.mubr.msk.f32.mxu0 %vm1976_vm1, %v1977_v22 }
 0x209   :  { %1811 = vmatmul.mubr.msk.f32.gmra.mrb[26].mxu0 %vm545_vm11, %v450_v19 }
 0x2b0   :  { %v710_v41 = vpop.f32.mrb[10].mxu1 }
 0x2b1   :  { %v1773_v42 = vpop.f32.mrb[11].mxu1 }
 0x2b4   :  { %v715_v43 = vpop.f32.mrb[12].mxu1 }
 0x2b5   :  { %v1776_v44 = vpop.f32.mrb[13].mxu1 }
 0x2b8   :  { %v720_v45 = vpop.f32.mrb[14].mxu1 }
 0x2b9   :  { %v1779_v48 = vpop.f32.mrb[15].mxu1 }
 0x2bc   :  { %v621_v49 = vpop.f32.mrb[10].mxu0 }
 0x2bd   :  { %v711_v50 = vadd.f32 %v710_v41, %v621_v49  ;;  %v1762_v51 = vpop.f32.mrb[11].mxu0  ;;  %v1129_v41 = vsel %vm1044_vm6, %v1592_v39, 0.0 }
 0x2be   :  { %1130 = vadd.xlane.f32.xlu1 %v1129_v41 }
 0x2c0   :  { %v626_v52 = vpop.f32.mrb[12].mxu0 }
 0x2c1   :  { %v716_v53 = vadd.f32 %v715_v43, %v626_v52  ;;  %v1765_v54 = vpop.f32.mrb[13].mxu0  ;;  %v1618_v43 = vld [vmem:[%s2415_s15] ss:$0 sm:$0xff] }
 0x2c4   :  { %v631_v55 = vpop.f32.mrb[14].mxu0 }
 0x2c5   :  { %v721_v56 = vadd.f32 %v720_v45, %v631_v55  ;;  %v1768_v57 = vpop.f32.mrb[15].mxu0 }
 0x2c8   :  { %v800_v58 = vpop.f32.mrb[16].mxu0 }
 0x2c9   :  { %v814_v60 = vadd.f32 %v800_v58, %v711_v50  ;;  %v1784_v61 = vpop.f32.mrb[17].mxu0 }
 0x2cb   :  { %v824_v62 = vadd.f32 %v1608_v59, %v814_v60 }
 0x2cc   :  { %v805_v63 = vpop.f32.mrb[18].mxu0 }
 0x2cd   :  { %v830_v0 = vmin.f32 %v824_v62, 0.0  ;;  %v815_v1 = vadd.f32 %v805_v63, %v716_v53  ;;  %v1787_v2 = vpop.f32.mrb[19].mxu0  ;;  %vm827_vm15 = vcmp.gt.f32.partialorder %v824_v62, 0.0 }
 0x2cf   :  { %v833_v3 = vmul.f32 1.442695, %v830_v0  ;;  %v825_v4 = vadd.f32 %v1608_v59, %v815_v1 }
 0x2d0   :  { %v810_v6 = vpop.f32.mrb[20].mxu0 }
 0x2d1   :  { %1896 = vpow2.f32 %v833_v3  ;;  %v831_v7 = vmin.f32 %v825_v4, 0.0  ;;  %v816_v8 = vadd.f32 %v810_v6, %v721_v56  ;;  %v1790_v9 = vpop.f32.mrb[21].mxu0  ;;  %vm828_vm2 = vcmp.gt.f32.partialorder %v825_v4, 0.0 }
 0x2d3   :  { %v835_v10 = vmul.f32 1.442695, %v831_v7  ;;  %v826_v11 = vadd.f32 %v1608_v59, %v816_v8 }
 0x2d4   :  { %v1002_v13 = vpop.f32.mrb[22].mxu0 }
 0x2d5   :  { %1898 = vpow2.f32 %v835_v10  ;;  %v832_v14 = vmin.f32 %v826_v11, 0.0  ;;  %v1806_v15 = vpop.f32.mrb[23].mxu0  ;;  %vm829_vm3 = vcmp.gt.f32.partialorder %v826_v11, 0.0  ;;  %v1138_v10 = vld [vmem:[%s2416_s16] sm:$0xff] }
 0x2d6   :  { %1827 = vmatprep.subr.mxu0 %v1138_v10 }
 0x2d7   :  { %v837_v16 = vmul.f32 1.442695, %v832_v14 }
 0x2d8   :  { %v1007_v17 = vpop.f32.mrb[24].mxu0 }
 0x2d9   :  { %1900 = vpow2.f32 %v837_v16  ;;  %v1809_v18 = vpop.f32.mrb[25].mxu0 }
 0x2db   :  { %v1897_v19 = vpop.eup %1896 }
 0x2dc   :  { %v1609_v20 = vadd.f32 -1.0, %v1897_v19  ;;  %v1012_v21 = vpop.f32.mrb[26].mxu0 }
 0x2dd   :  { %v1812_v26 = vpop.f32.mrb[27].mxu0 }
 0x2de   :  { %v2288_v27 = vsel %vm827_vm15, %v824_v62, %v1609_v20  ;;  %v1323_v26 = vld [vmem:[%s2419_s19] sm:$0xff] }
 0x2df   :  { %v1899_v28 = vpop.eup %1898  ;;  %1794 = vmatmul.mubr.msk.f32.vlgmr.msra.gmra.mrb[16].mxu1 %vm545_vm11, %v2288_v27 }
 0x2e0   :  { %1796 = vmatprep.mubr.msk.f32.mxu1 %vm1976_vm1, %v1977_v22  ;;  %v1610_v29 = vadd.f32 -1.0, %v1899_v28  ;;  %v1628_v28 = vld [vmem:[%s2418_s18] ss:$0 sm:$0xff] }
 0x2e2   :  { %v2294_v30 = vsel %vm828_vm2, %v825_v4, %v1610_v29 }
 0x2e3   :  { %v1901_v31 = vpop.eup %1900  ;;  %1797 = vmatmul.mubr.msk.f32.gmra.mrb[18].mxu1 %vm545_vm11, %v2294_v30 }
 0x2e4   :  { %1799 = vmatprep.mubr.msk.f32.mxu1 %vm1976_vm1, %v1977_v22  ;;  %v1611_v32 = vadd.f32 -1.0, %v1901_v31 }
 0x2e6   :  { %v2300_v33 = vsel %vm829_vm3, %v826_v11, %v1611_v32  ;;  %v1128_v11 = vpop.xlane.xlu0 %1127 }
 0x2e7   :  { %1800 = vmatmul.mubr.msk.f32.gmra.mrb[20].mxu1 %vm545_vm11, %v2300_v33  ;;  %v1132_v14 = vmax.f32 %v1128_v11, 1.0 }
 0x2e8   :  { %1819 = vmatprep.mubr.msk.f32.mxu1 %vm1044_vm6, %v1591_v37 }
 0x3b2   :  { %v922_v42 = vpop.f32.mrb[16].mxu1 }
 0x3b3   :  { %v1003_v44 = vadd.f32 %v1002_v13, %v922_v42  ;;  %v1795_v45 = vpop.f32.mrb[17].mxu1  ;;  %v1131_v13 = vpop.xlane.xlu1 %1130  ;;  %v1428_v42 = vld [vmem:[%s2421_s21] sm:$0xff] }
 0x3b4   :  { %v1133_v15 = vmax.f32 %v1131_v13, 1.0 }
 0x3b5   :  { %v1023_v48 = vadd.f32 %v1618_v43, %v1003_v44  ;;  %v1631_v44 = vld [vmem:[%s2420_s20] ss:$0 sm:$0xff]  ;;  %s1978_s20 = smov [#allocation2]  }
 0x3b6   :  { %v927_v49 = vpop.f32.mrb[18].mxu1 }
 0x3b7   :  { %v1029_v50 = vmin.f32 %v1023_v48, 0.0  ;;  %v1008_v51 = vadd.f32 %v1007_v17, %v927_v49  ;;  %v1798_v52 = vpop.f32.mrb[19].mxu1  ;;  %vm1026_vm7 = vcmp.gt.f32.partialorder %v1023_v48, 0.0 }
 0x3b9   :  { %v1032_v53 = vmul.f32 1.442695, %v1029_v50  ;;  %v1024_v54 = vadd.f32 %v1618_v43, %v1008_v51  ;;  %v1636_v50 = vld [vmem:[%s2422_s22] ss:$0 sm:$0xff]  ;;  %s1545_s22 = sshll.u32 %s1978_s20, 4  ;;  %s1546_s22 = int_to_ptr.vmem [resolvable:$true] %s1545_s22 }
 0x3ba   :  { %v932_v55 = vpop.f32.mrb[20].mxu1  ;;  %s1926_s9 = scalar_lea.vmem %s1546_s22, 256  ;;  %p1931_p1 = scmp.lt.s32.totalorder %s1546_s22, %s1546_s22 }
 0x3bb   :  { %1902 = vpow2.f32 %v1032_v53  ;;  %v1030_v56 = vmin.f32 %v1024_v54, 0.0  ;;  %v1013_v57 = vadd.f32 %v1012_v21, %v932_v55  ;;  %v1801_v58 = vpop.f32.mrb[21].mxu1  ;;  %vm1027_vm8 = vcmp.gt.f32.partialorder %v1024_v54, 0.0  ;;  %p1927_p0 = scmp.ne.s32.totalorder %s1546_s22, %s1926_s9  ;;  %p1932_p2 = scmp.lt.s32.totalorder %s1926_s9, %s1926_s9 }
 0x3bd   :  { %v1034_v59 = vmul.f32 1.442695, %v1030_v56  ;;  %v1025_v60 = vadd.f32 %v1618_v43, %v1013_v57  ;;  %p1933_p3 = por %p1932_p2, %p1931_p1 }
 0x3bf   :  { %1904 = vpow2.f32 %v1034_v59  ;;  %v1031_v61 = vmin.f32 %v1025_v60, 0.0  ;;  %vm1028_vm9 = vcmp.gt.f32.partialorder %v1025_v60, 0.0  ;;  %p1934_p4 = pnand %p1933_p3, %p1927_p0 }
 0x3c1   :  { %v1036_v62 = vmul.f32 1.442695, %v1031_v61 }
 0x3c3   :  { %1906 = vpow2.f32 %v1036_v62 }
 0x3c4   :  { %1908 = vrcp.f32 %v1132_v14 }
 0x3c5   :  { %v1903_v63 = vpop.eup %1902  ;;  %1910 = vrcp.f32 %v1133_v15 }
 0x3c6   :  { %v1619_v0 = vadd.f32 -1.0, %v1903_v63 }
 0x3c8   :  { %v1041_v3 = vsel %vm1026_vm7, %v1023_v48, %v1619_v0 }
 0x3c9   :  { %v1905_v1 = vpop.eup %1904 }
 0x3ca   :  { %v1620_v2 = vadd.f32 -1.0, %v1905_v1 }
 0x3cc   :  { %v1042_v4 = vsel %vm1027_vm8, %v1024_v54, %v1620_v2 }
 0x3cd   :  { %v1907_v6 = vpop.eup %1906  ;;  %v1868_v7 = vpack.c.bf16 %v1042_v4, %v1041_v3 }
 0x3ce   :  { %v1621_v8 = vadd.f32 -1.0, %v1907_v6  ;;  %v1909_v16 = vpop.eup %1908 }
 0x3cf   :  { %1869 = vmatprep.subr.bf16.mxu1 %v1868_v7  ;;  %v1911_v17 = vpop.eup %1910 }
 0x3d0   :  { %1871 = vmatpush3.bf16.msra.mxu1 %v1868_v7  ;;  %v1043_v9 = vsel %vm1028_vm9, %v1025_v60, %v1621_v8 }
 0x3d1   :  { %1817 = vmatprep.subr.mxu1 %v1043_v9 }
 0x3d4   :  { %1818 = vmatpush3.msra.mxu1 %v1043_v9 }
 0x3d5   :  { %1820 = vmatmul.mubr.msk.f32.vlgmr.msra.gmra.mrb[22].mxu1 %vm1044_vm6, %v1592_v39  ;;  %1832 = vmatprep.subr.mxu1 %v1323_v26 }
 0x3d6   :  { %1833 = vmatpush3.msra.mxu1 %v1323_v26 }
 0x3d7   :  { %1837 = vmatprep.subr.mxu1 %v1977_v22 }
 0x4a8   :  { %v1821_v18 = vpop.f32.mrb[22].mxu1 }
 0x4a9   :  { %v1117_v19 = vpop.f32.mrb[23].mxu1  ;;  %v1137_v21 = vmul.f32 %v1911_v17, %v1821_v18 }
 0x4aa   :  { %v1135_v20 = vmul.f32 %v1909_v16, %v1117_v19 }
 0x4ac   :  { %1824 = vmatprep.mubr.msk.f32.mxu0 %vm545_vm11, %v1135_v20 }
 0x4ad   :  { %1825 = vmatmul.mubr.msk.f32.vlgmr.msra.gmra.mrb[28].mxu0 %vm545_vm11, %v1137_v21 }
 0x4ae   :  { %1829 = vmatprep.mubr.msk.f32.mxu0 %vm545_vm11, %v2200_v47  ;;  %1828 = vmatpush3.msra.mxu0 %v1138_v10 }
 0x4b5   :  { %1830 = vmatmul.mubr.msk.f32.vlgmr.msra.gmra.mrb[28].mxu0 %vm545_vm11, %v2198_v46 }
 0x588   :  { %v1831_v29 = vpop.f32.mrb[28].mxu0 }
 0x589   :  { %v1310_v31 = vadd.f32 %v1831_v29, %v1628_v28  ;;  %v1293_v32 = vpop.f32.mrb[29].mxu0 }
 0x58a   :  { %v1309_v47 = vadd.f32 %v1628_v28, %v1293_v32 }
 0x58b   :  { %v1314_v34 = vmin.f32 %v1310_v31, 0.0  ;;  %vm1312_vm12 = vcmp.gt.f32.partialorder %v1310_v31, 0.0 }
 0x58c   :  { %v1313_v35 = vmin.f32 %v1309_v47, 0.0  ;;  %vm1311_vm10 = vcmp.gt.f32.partialorder %v1309_v47, 0.0 }
 0x58d   :  { %v1317_v36 = vmul.f32 1.442695, %v1314_v34 }
 0x58e   :  { %v1315_v46 = vmul.f32 1.442695, %v1313_v35 }
 0x58f   :  { %1912 = vpow2.f32 %v1317_v36 }
 0x590   :  { %1914 = vpow2.f32 %v1315_v46 }
 0x599   :  { %v1913_v37 = vpop.eup %1912 }
 0x59a   :  { %v1915_v39 = vpop.eup %1914  ;;  %v1630_v40 = vadd.f32 -1.0, %v1913_v37 }
 0x59b   :  { %v1629_v41 = vadd.f32 -1.0, %v1915_v39 }
 0x59c   :  { %v1322_v43 = vsel %vm1312_vm12, %v1310_v31, %v1630_v40 }
 0x59d   :  { %v1321_v38 = vsel %vm1311_vm10, %v1309_v47, %v1629_v41 }
 0x59e   :  { %1834 = vmatprep.mubr.msk.f32.mxu1 %vm545_vm11, %v1321_v38 }
 0x59f   :  { %1835 = vmatmul.mubr.msk.f32.vlgmr.msra.gmra.mrb[24].mxu1 %vm545_vm11, %v1322_v43 }
 0x5a0   :  { %1838 = vmatpush3.msra.mxu1 %v1428_v42  ;;  %1839 = vmatprep.mubr.msk.f32.mxu1 %vm1976_vm1, %v1977_v22 }
 0x5a3   :  { %1840 = vmatmul.mubr.msk.f32.vlgmr.msra.gmra.mrb[26].mxu1 %vm545_vm11, %v2288_v27 }
 0x5a4   :  { %1842 = vmatprep.mubr.msk.f32.mxu1 %vm1976_vm1, %v1977_v22 }
 0x5a7   :  { %1843 = vmatmul.mubr.msk.f32.gmra.mrb[28].mxu1 %vm545_vm11, %v2294_v30 }
 0x5a8   :  { %1845 = vmatprep.mubr.msk.f32.mxu1 %vm1976_vm1, %v1977_v22 }
 0x5ab   :  { %1846 = vmatmul.mubr.msk.f32.gmra.mrb[30].mxu1 %vm545_vm11, %v2300_v33 }
 0x672   :  { %v1836_v45 = vpop.f32.mrb[24].mxu1 }
 0x673   :  { %v1409_v48 = vadd.f32 %v1836_v45, %v1631_v44  ;;  %v1403_v49 = vpop.f32.mrb[25].mxu1 }
 0x674   :  { %v1404_v27 = vadd.f32 %v1631_v44, %v1403_v49 }
 0x675   :  { %v1413_v30 = vadd.f32 %v1409_v48, %v2141_v12 }
 0x676   :  { %v1412_v51 = vadd.f32 %v1404_v27, %v2122_v5  ;;  %v1502_v22 = vpop.f32.mrb[26].mxu1 }
 0x677   :  { %v1417_v52 = vmin.f32 %v1413_v30, 0.0  ;;  %v1503_v53 = vadd.f32 %v1636_v50, %v1502_v22  ;;  %v1841_v33 = vpop.f32.mrb[27].mxu1  ;;  %vm1415_vm1 = vcmp.gt.f32.partialorder %v1413_v30, 0.0 }
 0x678   :  { %v1416_v54 = vmin.f32 %v1412_v51, 0.0  ;;  %vm1414_vm11 = vcmp.gt.f32.partialorder %v1412_v51, 0.0 }
 0x679   :  { %v1420_v55 = vmul.f32 1.442695, %v1417_v52  ;;  %v1516_v56 = vadd.f32 %v1503_v53, %v2168_v23 }
 0x67a   :  { %v1418_v57 = vmul.f32 1.442695, %v1416_v54  ;;  %v1507_v58 = vpop.f32.mrb[28].mxu1 }
 0x67b   :  { %1916 = vpow2.f32 %v1420_v55  ;;  %v1522_v59 = vmin.f32 %v1516_v56, 0.0  ;;  %v1508_v60 = vadd.f32 %v1636_v50, %v1507_v58  ;;  %v1844_v61 = vpop.f32.mrb[29].mxu1  ;;  %vm1519_vm13 = vcmp.gt.f32.partialorder %v1516_v56, 0.0 }
 0x67c   :  { %1918 = vpow2.f32 %v1418_v57 }
 0x67d   :  { %v1525_v62 = vmul.f32 1.442695, %v1522_v59  ;;  %v1517_v12 = vadd.f32 %v1508_v60, %v2179_v24 }
 0x67e   :  { %v1512_v63 = vpop.f32.mrb[30].mxu1 }
 0x67f   :  { %1920 = vpow2.f32 %v1525_v62  ;;  %v1523_v5 = vmin.f32 %v1517_v12, 0.0  ;;  %v1513_v0 = vadd.f32 %v1636_v50, %v1512_v63  ;;  %v1847_v1 = vpop.f32.mrb[31].mxu1 }
 0x681   :  { %v1527_v2 = vmul.f32 1.442695, %v1523_v5  ;;  %v1518_v3 = vadd.f32 %v1513_v0, %v2188_v25 }
 0x683   :  { %1922 = vpow2.f32 %v1527_v2  ;;  %v1524_v23 = vmin.f32 %v1518_v3, 0.0 }
 0x685   :  { %v1917_v4 = vpop.eup %1916  ;;  %v1529_v6 = vmul.f32 1.442695, %v1524_v23 }
 0x686   :  { %v1919_v7 = vpop.eup %1918  ;;  %v1635_v8 = vadd.f32 -1.0, %v1917_v4 }
 0x687   :  { %v1634_v9 = vadd.f32 -1.0, %v1919_v7  ;;  %1924 = vpow2.f32 %v1529_v6 }
 0x688   :  { %v1425_v24 = vsel %vm1415_vm1, %v1413_v30, %v1635_v8 }
 0x689   :  { %v1921_v10 = vpop.eup %1920  ;;  %v1424_v11 = vsel %vm1414_vm11, %v1412_v51, %v1634_v9  ;;  %1427 = vst.msk [vmem:[#allocation2 + $0x8] sm:$0xff] %vm94_vm0, %v1425_v24 }
 0x68a   :  { %v1640_v13 = vadd.f32 -1.0, %v1921_v10  ;;  %1426 = vst.msk [vmem:[#allocation2] sm:$0xff] %vm94_vm0, %v1424_v11 }
 0x68b   :  { %1937 = shalt.err (!%p1934_p4)
}
 0x68c   :  { %s1938_s30 = scalar_lea.hbm %s2423_s23, 256 }
 0x68d   :  { %p1939_p5 = scmp.ne.s32.totalorder %s2423_s23, %s1938_s30  ;;  %p1942_p6 = scmp.lt.u32.totalorder %s1938_s30, %s2423_s23 }
 0x68f   :  { %p1944_p7 = pnand %p1942_p6, %p1939_p5 }
 0x691   :  { %1947 = shalt.err (!%p1944_p7)
}
 0x692   :  { %s1979_s12 = smov 128   ;;  %s1980_s14 = smov 8   ;;  %v1534_v25 = vsel %vm1519_vm13, %v1516_v56, %v1640_v13  ;;  %v1923_v14 = vpop.eup %1922  ;;  %vm1520_vm14 = vcmp.gt.f32.partialorder %v1517_v12, 0.0  ;;  %vm1521_vm15 = vcmp.gt.f32.partialorder %v1518_v3, 0.0 }
 0x693   :  { %1551 = dma.vmem_to_hbm [thread:$0]  %s1546_s22, 256, %s2423_s23, [#allocation3], %s1979_s12, %s1979_s12, %s1980_s14   ;;  %1537 = vst.msk [vmem:[#allocation4] sm:$0xff] %vm94_vm0, %v1534_v25  ;;  %v1641_v15 = vadd.f32 -1.0, %v1923_v14  ;;  %v1925_v17 = vpop.eup %1924 }
 0x694   :  { %s1981_s26 = smov [#allocation4]   ;;  %v1642_v18 = vadd.f32 -1.0, %v1925_v17 }
 0x695   :  { %v1535_v16 = vsel %vm1520_vm14, %v1517_v12, %v1641_v15  ;;  %s1557_s25 = sshll.u32 %s1981_s26, 4  ;;  %s1558_s25 = int_to_ptr.vmem [resolvable:$true] %s1557_s25 }
 0x696   :  { %1538 = vst.msk [vmem:[#allocation4 + $0x8] sm:$0xff] %vm94_vm0, %v1535_v16  ;;  %v1536_v19 = vsel %vm1521_vm15, %v1518_v3, %v1642_v18  ;;  %s1948_s23 = scalar_lea.vmem %s1558_s25, 384  ;;  %p1953_p9 = scmp.lt.s32.totalorder %s1558_s25, %s1558_s25 }
 0x697   :  { %1539 = vst.msk [vmem:[#allocation4 + $0x10] sm:$0xff] %vm94_vm0, %v1536_v19  ;;  %p1949_p8 = scmp.ne.s32.totalorder %s1558_s25, %s1948_s23  ;;  %p1954_p10 = scmp.lt.s32.totalorder %s1948_s23, %s1948_s23 }
 0x699   :  { %p1955_p11 = por %p1954_p10, %p1953_p9 }
 0x69b   :  { %p1956_p12 = pnand %p1955_p11, %p1949_p8 }
 0x69d   :  { %1959 = shalt.err (!%p1956_p12)
}
 0x69e   :  { %s1960_s17 = scalar_lea.hbm %s2424_s24, 384 }
 0x69f   :  { %p1961_p13 = scmp.ne.s32.totalorder %s2424_s24, %s1960_s17  ;;  %p1964_p0 = scmp.lt.u32.totalorder %s1960_s17, %s2424_s24 }
 0x6a1   :  { %p1966_p1 = pnand %p1964_p0, %p1961_p13 }
 0x6a3   :  { %1969 = shalt.err (!%p1966_p1)
}
 0x6a4   :  { %1563 = dma.vmem_to_hbm [thread:$0]  %s1558_s25, 384, %s2424_s24, [#allocation5], %s1979_s12, %s1979_s12, %s1980_s14  }
 0x6a5   :  { %1970 = dma.done.wait [#allocation3], 256  }
 0x6a6   :  { %1971 = vsyncadd [#allocation3], 4294967040 }
 0x6a7   :  { %1972 = dma.done.wait [#allocation5], 384  }
 0x6a8   :  { %1973 = vsyncadd [#allocation5], 4294966912 }
 0x6a9   :  { %1570 = vsyncpa [#allocation3], 1 }
 0x6aa   :  { %1571 = vsyncpa [#allocation5], 1 }

</bundles_post_ra>
